<compile_context>
chip_gen: v7x
topology: tpu7x:2x2x1
jax: 0.10.0
libtpu: 0.0.40
codegen_flags: <defaults>
</compile_context>

<pallas_src>
import jax
import jax.numpy as jnp
from jax.experimental import pallas as pl
from jax.experimental.pallas import tpu as pltpu


def value_net_kernel(x_ref, w1_ref, b1_ref, w2_ref, b2_ref, w3_ref, b3_ref, o_ref):
    # Layer 1: Linear(state_dim -> H1) + ReLU.  Matmul inputs in the weight
    # dtype (f32 or bf16), f32 MXU accumulation, f32 epilogue (VPU-friendly
    # on v5e which has no bf16 VPU path).
    x = x_ref[...].astype(w1_ref.dtype)
    h = jnp.dot(x, w1_ref[...], preferred_element_type=jnp.float32)
    h = jnp.maximum(h + b1_ref[...].astype(jnp.float32), 0.0)

    # Layer 2: Linear(H1 -> H2) + ReLU.  Cast back to the compute dtype only
    # when feeding the next MXU pass.
    h = jnp.dot(h.astype(w2_ref.dtype), w2_ref[...],
                preferred_element_type=jnp.float32)
    h = jnp.maximum(h + b2_ref[...].astype(jnp.float32), 0.0)

    # Layer 3: Linear(H2 -> 1), no activation.  w3 is a (1, H2) row; contracting
    # it against h^T produces the (1, tile_b) lane-dense output directly, so
    # there is no padded (H2, 1) weight tile and no 1-lane-wide output stores.
    # The single degenerate-M MXU pass here is negligible next to layer 2.
    w3r = w3_ref[...]
    out = jnp.dot(w3r, h.astype(w3r.dtype).T,
                  preferred_element_type=jnp.float32)      # (1, tile_b)
    o_ref[...] = (out + b3_ref[0]).astype(o_ref.dtype)


def _round_up(x, m):
    return ((x + m - 1) // m) * m


def value_net_forward(state, params, *, tile_b=256, compute_dtype=None):
    """Fused MLP forward. state: [B, state_dim] -> [B, 1].

    tile_b: batch rows per grid step (use 128-multiples on v5e, 256-multiples
            on v6e/v7x).  B is padded up to a tile multiple internally.
    compute_dtype: optional matmul-input dtype (e.g. jnp.bfloat16) to halve
            weight HBM traffic; accumulation/epilogue stay f32.
    """
    w1, b1, w2, b2, w3, b3 = params
    B, D = state.shape
    H1 = w1.shape[1]
    H2 = w2.shape[1]

    if compute_dtype is not None:
        w1 = w1.astype(compute_dtype)
        w2 = w2.astype(compute_dtype)
        w3 = w3.astype(compute_dtype)

    # Final-layer weight as a lane-oriented row (1, H2); b3 as an SMEM scalar.
    w3_row = w3.reshape(1, H2)
    b3_s = jnp.asarray(b3, jnp.float32).reshape((1,))

    # Pad the batch up to a tile multiple (at least 128 so the lane-dense
    # output block stays a multiple of 128 lanes).  Small batches -> grid=(1,).
    tile_b = min(tile_b, _round_up(B, 128))
    B_pad = _round_up(B, tile_b)
    if B_pad != B:
        state = jnp.pad(state, ((0, B_pad - B), (0, 0)))
    n_tiles = B_pad // tile_b

    flops = 2 * B_pad * (D * H1 + H1 * H2 + H2)
    bytes_accessed = int(
        state.size * state.dtype.itemsize
        + sum(int(a.size) * a.dtype.itemsize for a in (w1, b1, w2, b2, w3_row))
        + b3_s.size * 4
        + B_pad * state.dtype.itemsize)

    out_row = pl.pallas_call(
        value_net_kernel,
        out_shape=jax.ShapeDtypeStruct((1, B_pad), state.dtype),
        grid_spec=pltpu.PrefetchScalarGridSpec(
            num_scalar_prefetch=0,
            grid=(n_tiles,),
            in_specs=[
                pl.BlockSpec((tile_b, D), lambda i: (i, 0)),   # x: batch tile
                pl.BlockSpec((D, H1), lambda i: (0, 0)),       # w1 (resident)
                pl.BlockSpec((1, H1), lambda i: (0, 0)),       # b1
                pl.BlockSpec((H1, H2), lambda i: (0, 0)),      # w2 (resident)
                pl.BlockSpec((1, H2), lambda i: (0, 0)),       # b2
                pl.BlockSpec((1, H2), lambda i: (0, 0)),       # w3 row (resident)
                pl.BlockSpec(memory_space=pltpu.MemorySpace.SMEM),  # b3 scalar
            ],
            out_specs=pl.BlockSpec((1, tile_b), lambda i: (0, i)),  # lane-dense
        ),
        compiler_params=pltpu.CompilerParams(
            dimension_semantics=("parallel",),
        ),
        cost_estimate=pl.CostEstimate(
            flops=flops, transcendentals=0, bytes_accessed=bytes_accessed),
    )(state, w1, b1, w2, b2, w3_row, b3_s)

    return out_row[0, :B].reshape(B, 1).astype(state.dtype)


def init_params(key, state_dim, hidden_units=(256, 256), dtype=jnp.float32):
    """Deterministic init mirroring nn.Linear shapes (stored as [in, out])."""
    dims = [state_dim, *hidden_units, 1]
    params = []
    for i_dim, o_dim in zip(dims[:-1], dims[1:]):
        key, kw, kb = jax.random.split(key, 3)
        bound = 1.0 / (i_dim ** 0.5)  # torch nn.Linear default uniform bound
        w = jax.random.uniform(kw, (i_dim, o_dim), dtype, minval=-bound, maxval=bound)
        b = jax.random.uniform(kb, (1, o_dim), dtype, minval=-bound, maxval=bound)
        params.extend([w, b])
    return tuple(params)


def reference_forward(state, params):
    w1, b1, w2, b2, w3, b3 = params
    h = jnp.maximum(state @ w1 + b1, 0.0)
    h = jnp.maximum(h @ w2 + b2, 0.0)
    return h @ w3 + b3


if __name__ == "__main__":
    key = jax.random.PRNGKey(0)
    B, state_dim = 16, 32
    hidden_units = (256, 256)

    key, kx = jax.random.split(key)
    state = jax.random.normal(kx, (B, state_dim), jnp.float32)
    params = init_params(key, state_dim, hidden_units)

    # f32 path, single-tile grid (B=16 padded to one 128-row block).
    out = jax.block_until_ready(value_net_forward(state, params))
    ref = reference_forward(state, params)
    assert out.shape == (B, 1), out.shape
    assert jnp.allclose(out, ref, atol=1e-4, rtol=1e-4), "f32 mismatch vs reference"

    # Multi-tile grid + batch padding (B not a multiple of the 256-row tile).
    B2 = 384
    key, kx2 = jax.random.split(key)
    state2 = jax.random.normal(kx2, (B2, state_dim), jnp.float32)
    out2 = jax.block_until_ready(value_net_forward(state2, params, tile_b=256))
    ref2 = reference_forward(state2, params)
    assert out2.shape == (B2, 1), out2.shape
    assert jnp.allclose(out2, ref2, atol=1e-4, rtol=1e-4), "multi-tile mismatch"

    # bf16-weight path (halved weight HBM traffic); loose tolerance vs f32 ref.
    out_bf16 = jax.block_until_ready(
        value_net_forward(state, params, compute_dtype=jnp.bfloat16))
    assert out_bf16.shape == (B, 1), out_bf16.shape
    assert jnp.allclose(out_bf16, ref, atol=1e-1, rtol=1e-1), "bf16 mismatch"

    print("KERNEL_OK")
</pallas_src>

<mosaic_0001>
module attributes {stable_mosaic.version = 11 : i64} {
  func.func @value_net_kernel(%arg0: i32, %arg1: memref<128x32xf32, #tpu.memory_space<vmem>>, %arg2: memref<32x256xf32, #tpu.memory_space<vmem>>, %arg3: memref<1x256xf32, #tpu.memory_space<vmem>>, %arg4: memref<256x256xf32, #tpu.memory_space<vmem>>, %arg5: memref<1x256xf32, #tpu.memory_space<vmem>>, %arg6: memref<1x256xf32, #tpu.memory_space<vmem>>, %arg7: memref<1xf32, #tpu.memory_space<smem>>, %arg8: memref<1x128xf32, #tpu.memory_space<vmem>>) attributes {dimension_semantics = [#tpu.dimension_semantics<parallel>], iteration_bounds = array<i64: 1>, scalar_prefetch = 0 : i64, scratch_operands = 0 : i64, tpu.core_type = #tpu.core_type<tc>, window_params = [{transform_indices = @transform_0, window_bounds = array<i64: 128, 32>}, {pipeline_mode = #tpu.pipeline_mode<synchronous>, transform_indices = @transform_1, window_bounds = array<i64: 32, 256>}, {pipeline_mode = #tpu.pipeline_mode<synchronous>, transform_indices = @transform_2, window_bounds = array<i64: 1, 256>}, {pipeline_mode = #tpu.pipeline_mode<synchronous>, transform_indices = @transform_3, window_bounds = array<i64: 256, 256>}, {pipeline_mode = #tpu.pipeline_mode<synchronous>, transform_indices = @transform_4, window_bounds = array<i64: 1, 256>}, {pipeline_mode = #tpu.pipeline_mode<synchronous>, transform_indices = @transform_5, window_bounds = array<i64: 1, 256>}, {transform_indices = @transform_6, window_bounds = array<i64: 1>}, {transform_indices = @transform_7, window_bounds = array<i64: 1, 128>}]} {
    %c0 = arith.constant 0 : index
    %c0_0 = arith.constant 0 : index
    %0 = vector.load %arg1[%c0, %c0_0] : memref<128x32xf32, #tpu.memory_space<vmem>>, vector<128x32xf32>
    %c0_1 = arith.constant 0 : index
    %c0_2 = arith.constant 0 : index
    %1 = vector.load %arg2[%c0_1, %c0_2] : memref<32x256xf32, #tpu.memory_space<vmem>>, vector<32x256xf32>
    %cst = arith.constant dense<0.000000e+00> : vector<128x256xf32>
    %2 = tpu.matmul %0, %1, %cst {dimension_numbers = #tpu.dot_dimension_numbers<[1], [0], [0], [1], [0, 0, 1, 1], [], []>} : vector<128x32xf32>, vector<32x256xf32>, vector<128x256xf32> -> vector<128x256xf32>
    %c0_3 = arith.constant 0 : index
    %c0_4 = arith.constant 0 : index
    %3 = vector.load %arg3[%c0_3, %c0_4] : memref<1x256xf32, #tpu.memory_space<vmem>>, vector<1x256xf32>
    %4 = vector.broadcast %3 : vector<1x256xf32> to vector<128x256xf32>
    %5 = arith.addf %2, %4 : vector<128x256xf32>
    %cst_5 = arith.constant 0.000000e+00 : f32
    %6 = vector.broadcast %cst_5 : f32 to vector<128x256xf32>
    %7 = arith.maximumf %5, %6 : vector<128x256xf32>
    %c0_6 = arith.constant 0 : index
    %c0_7 = arith.constant 0 : index
    %8 = vector.load %arg4[%c0_6, %c0_7] : memref<256x256xf32, #tpu.memory_space<vmem>>, vector<256x256xf32>
    %cst_8 = arith.constant dense<0.000000e+00> : vector<128x256xf32>
    %9 = tpu.matmul %7, %8, %cst_8 {dimension_numbers = #tpu.dot_dimension_numbers<[1], [0], [0], [1], [0, 0, 1, 1], [], []>} : vector<128x256xf32>, vector<256x256xf32>, vector<128x256xf32> -> vector<128x256xf32>
    %c0_9 = arith.constant 0 : index
    %c0_10 = arith.constant 0 : index
    %10 = vector.load %arg5[%c0_9, %c0_10] : memref<1x256xf32, #tpu.memory_space<vmem>>, vector<1x256xf32>
    %11 = vector.broadcast %10 : vector<1x256xf32> to vector<128x256xf32>
    %12 = arith.addf %9, %11 : vector<128x256xf32>
    %cst_11 = arith.constant 0.000000e+00 : f32
    %13 = vector.broadcast %cst_11 : f32 to vector<128x256xf32>
    %14 = arith.maximumf %12, %13 : vector<128x256xf32>
    %c0_12 = arith.constant 0 : index
    %c0_13 = arith.constant 0 : index
    %15 = vector.load %arg6[%c0_12, %c0_13] : memref<1x256xf32, #tpu.memory_space<vmem>>, vector<1x256xf32>
    %16 = tpu.transpose %14, [1, 0] : vector<128x256xf32> -> vector<256x128xf32>
    %cst_14 = arith.constant dense<0.000000e+00> : vector<1x128xf32>
    %17 = tpu.matmul %15, %16, %cst_14 {dimension_numbers = #tpu.dot_dimension_numbers<[1], [0], [0], [1], [0, 0, 1, 1], [], []>} : vector<1x256xf32>, vector<256x128xf32>, vector<1x128xf32> -> vector<1x128xf32>
    %c0_15 = arith.constant 0 : index
    %18 = memref.load %arg7[%c0_15] : memref<1xf32, #tpu.memory_space<smem>>
    %19 = vector.broadcast %18 : f32 to vector<1x128xf32>
    %20 = arith.addf %17, %19 : vector<1x128xf32>
    %c0_16 = arith.constant 0 : index
    %c0_17 = arith.constant 0 : index
    %21 = vector.load %arg8[%c0_16, %c0_17] : memref<1x128xf32, #tpu.memory_space<vmem>>, vector<1x128xf32>
    tpu.vector_store %arg8[%c0_16, %c0_17], %20 {strides = array<i32>} : memref<1x128xf32, #tpu.memory_space<vmem>>, vector<1x128xf32>,
    return
  }
  func.func @transform_0(%arg0: i32) -> (i32, i32) {
    %c0_i32 = arith.constant 0 : i32
    %c0_i32_0 = arith.constant 0 : i32
    return %arg0, %c0_i32 : i32, i32
  }
  func.func @transform_1(%arg0: i32) -> (i32, i32) {
    %c0_i32 = arith.constant 0 : i32
    %c0_i32_0 = arith.constant 0 : i32
    %c0_i32_1 = arith.constant 0 : i32
    return %c0_i32, %c0_i32_0 : i32, i32
  }
  func.func @transform_2(%arg0: i32) -> (i32, i32) {
    %c0_i32 = arith.constant 0 : i32
    %c0_i32_0 = arith.constant 0 : i32
    %c0_i32_1 = arith.constant 0 : i32
    return %c0_i32, %c0_i32_0 : i32, i32
  }
  func.func @transform_3(%arg0: i32) -> (i32, i32) {
    %c0_i32 = arith.constant 0 : i32
    %c0_i32_0 = arith.constant 0 : i32
    %c0_i32_1 = arith.constant 0 : i32
    return %c0_i32, %c0_i32_0 : i32, i32
  }
  func.func @transform_4(%arg0: i32) -> (i32, i32) {
    %c0_i32 = arith.constant 0 : i32
    %c0_i32_0 = arith.constant 0 : i32
    %c0_i32_1 = arith.constant 0 : i32
    return %c0_i32, %c0_i32_0 : i32, i32
  }
  func.func @transform_5(%arg0: i32) -> (i32, i32) {
    %c0_i32 = arith.constant 0 : i32
    %c0_i32_0 = arith.constant 0 : i32
    %c0_i32_1 = arith.constant 0 : i32
    return %c0_i32, %c0_i32_0 : i32, i32
  }
  func.func @transform_6(%arg0: i32) -> i32 {
    %c0_i32 = arith.constant 0 : i32
    %c0_i32_0 = arith.constant 0 : i32
    return %c0_i32 : i32
  }
  func.func @transform_7(%arg0: i32) -> (i32, i32) {
    %c0_i32 = arith.constant 0 : i32
    %c0_i32_0 = arith.constant 0 : i32
    return %c0_i32, %arg0 : i32, i32
  }
}

</mosaic_0001>

<bundles_post_ra>
// kernel: tpu_custom_call.1
= control target key start
LH: loop header
LB: loop body
LE: loop exit
PB: predicated region body
PF: predicated region fallthrough
CT: control target
= control target key end

     0   :  { %13 = vsyncpa [#allocation4], 0  ;;  %s1133_s0 = inlined_call_operand.vmem [shape: f32[128,32], index: 0, kind: input, shape index: {}]   ;;  %s1134_s1 = inlined_call_operand.vmem [shape: f32[32,256], index: 1, kind: input, shape index: {}]   ;;  %s1135_s2 = inlined_call_operand.vmem [shape: f32[1,256], index: 2, kind: input, shape index: {}]   ;;  %s1136_s3 = inlined_call_operand.hbm [shape: f32[256,256], index: 3, kind: input, shape index: {}]   ;;  %s1137_s4 = inlined_call_operand.vmem [shape: f32[1,256], index: 4, kind: input, shape index: {}]   ;;  %s1138_s5 = inlined_call_operand.vmem [shape: f32[1,256], index: 5, kind: input, shape index: {}]   ;;  %s1139_s6 = inlined_call_operand.<no memory space> [shape: f32[1], index: 6, kind: input, shape index: {}]   ;;  %s1140_s7 = inlined_call_operand.hbm [shape: f32[1,128], index: 7, kind: output, shape index: {}]  }
   0x1   :  { %14 = vsyncpa [#allocation5], 0  ;;  %s862_s24 = smov [#allocation3]   ;;  %s814_s28 = scalar_lea.hbm %s1136_s3, 8192 }
   0x2   :  { %s26_s25 = sshll.u32 %s862_s24, 4  ;;  %p815_p0 = scmp.ne.s32.totalorder %s1136_s3, %s814_s28  ;;  %s27_s25 = int_to_ptr.vmem [resolvable:$true] %s26_s25 }
   0x3   :  { %p818_p1 = scmp.lt.u32.totalorder %s814_s28, %s1136_s3 }
   0x5   :  { %p820_p2 = pnand %p818_p1, %p815_p0 }
   0x7   :  { %823 = shalt.err (!%p820_p2)
}
   0x8   :  { %s824_s10 = scalar_lea.vmem %s27_s25, 8192  ;;  %p829_p4 = scmp.lt.s32.totalorder %s27_s25, %s27_s25 }
   0x9   :  { %p825_p3 = scmp.ne.s32.totalorder %s27_s25, %s824_s10  ;;  %p830_p5 = scmp.lt.s32.totalorder %s824_s10, %s824_s10 }
   0xb   :  { %p831_p6 = por %p830_p5, %p829_p4 }
   0xd   :  { %p832_p7 = pnand %p831_p6, %p825_p3 }
   0xf   :  { %835 = shalt.err (!%p832_p7)
}
  0x10   :  { %s863_s11 = smov 256   ;;  %s864_s12 = smov 16  }
  0x11   :  { %32 = dma.hbm_to_vmem [thread:$0]  %s1136_s3, 8192, %s27_s25, [#allocation4], %s863_s11, %s863_s11, %s864_s12  }
  0x12   :  { %858 = dma.done.wait [#allocation4], 8192  }
  0x13   :  { %859 = vsyncadd [#allocation4], 4294959104  ;;  %v865_v0 = vmov 0.0   ;;  %v59_v1 = vld [vmem:[%s1134_s1 + $0x8] sm:$0xff]  ;;  %v61_v2 = vld [vmem:[%s1134_s1 + $0x18] sm:$0xff]  ;;  %vm78_vm0 = vcmask 261120  }
  0x14   :  { %191 = vmatprep.mubr.f32.mxu0 %v865_v0  ;;  %v58_v3 = vld [vmem:[%s1134_s1] sm:$0xff]  ;;  %v705_v4 = vpack.c.bf16 %v61_v2, %v59_v1  ;;  %v60_v5 = vld [vmem:[%s1134_s1 + $0x10] sm:$0xff]  ;;  %v63_v6 = vld [vmem:[%s1134_s1 + $0x28] sm:$0xff]  ;;  %s866_s17 = smov [#allocation6]  }
  0x15   :  { %v65_v7 = vld [vmem:[%s1134_s1 + $0x38] sm:$0xff]  ;;  %v707_v8 = vpack.c.bf16 %v60_v5, %v58_v3  ;;  %v62_v10 = vld [vmem:[%s1134_s1 + $0x20] sm:$0xff]  ;;  %v64_v11 = vld [vmem:[%s1134_s1 + $0x30] sm:$0xff]  ;;  %s680_s18 = sshll.u32 %s866_s17, 4  ;;  %s681_s18 = int_to_ptr.vmem [resolvable:$true] %s680_s18 }
  0x16   :  { %v709_v9 = vpack.c.bf16 %v65_v7, %v63_v6  ;;  %706 = vmatprep.subr.bf16.mxu0 %v705_v4  ;;  %v711_v12 = vpack.c.bf16 %v64_v11, %v62_v10  ;;  %v42_v13 = vld [vmem:[%s1133_s0] sm:$0xff]  ;;  %v321_v14 = vld [vmem:[#allocation3 + $0x8] sm:$0xff]  ;;  %v323_v15 = vld [vmem:[#allocation3 + $0x18] sm:$0xff]  ;;  %s836_s19 = scalar_lea.vmem %s681_s18, 16  ;;  %s840_s20 = scalar_lea.vmem %s681_s18, 32 }
  0x17   :  { %708 = vmatpush1.bf16.msra.mxu0 %v707_v8  ;;  %v320_v16 = vld [vmem:[#allocation3] sm:$0xff]  ;;  %v713_v17 = vpack.c.bf16 %v323_v15, %v321_v14  ;;  %v322_v18 = vld [vmem:[#allocation3 + $0x10] sm:$0xff]  ;;  %v325_v19 = vld [vmem:[#allocation3 + $0x28] sm:$0xff]  ;;  %p837_p8 = scmp.ne.s32.totalorder %s681_s18, %s836_s19  ;;  %p841_p9 = scmp.lt.s32.totalorder %s681_s18, %s681_s18 }
  0x18   :  { %710 = vmatprep.subr.bf16.mxu0 %v709_v9  ;;  %v327_v20 = vld [vmem:[#allocation3 + $0x38] sm:$0xff]  ;;  %v715_v21 = vpack.c.bf16 %v322_v18, %v320_v16  ;;  %v324_v23 = vld [vmem:[#allocation3 + $0x20] sm:$0xff]  ;;  %v326_v24 = vld [vmem:[#allocation3 + $0x30] sm:$0xff]  ;;  %p842_p10 = scmp.lt.s32.totalorder %s840_s20, %s836_s19 }
  0x19   :  { %v717_v22 = vpack.c.bf16 %v327_v20, %v325_v19  ;;  %v329_v25 = vld [vmem:[#allocation3 + $0x48] sm:$0xff]  ;;  %714 = vmatprep.subr.bf16.mxu1 %v713_v17  ;;  %v331_v26 = vld [vmem:[#allocation3 + $0x58] sm:$0xff]  ;;  %v719_v28 = vpack.c.bf16 %v326_v24, %v324_v23  ;;  %v328_v30 = vld [vmem:[#allocation3 + $0x40] sm:$0xff] }
  0x1a   :  { %v43_v27 = vld [vmem:[%s1133_s0 + $0x8] sm:$0xff]  ;;  %716 = vmatpush1.bf16.msra.mxu1 %v715_v21  ;;  %v721_v29 = vpack.c.bf16 %v331_v26, %v329_v25  ;;  %v330_v31 = vld [vmem:[#allocation3 + $0x50] sm:$0xff]  ;;  %v335_v33 = vld [vmem:[#allocation3 + $0x78] sm:$0xff]  ;;  %p843_p11 = por %p842_p10, %p841_p9 }
  0x1b   :  { %712 = vmatpush1.bf16.msra.mxu0 %v711_v12  ;;  %718 = vmatprep.subr.bf16.mxu1 %v717_v22  ;;  %v333_v32 = vld [vmem:[#allocation3 + $0x68] sm:$0xff]  ;;  %v44_v34 = vld [vmem:[%s1133_s0 + $0x10] sm:$0xff]  ;;  %v723_v35 = vpack.c.bf16 %v330_v31, %v328_v30  ;;  %v332_v37 = vld [vmem:[#allocation3 + $0x60] sm:$0xff] }
  0x1c   :  { %v725_v36 = vpack.c.bf16 %v335_v33, %v333_v32  ;;  %v334_v38 = vld [vmem:[#allocation3 + $0x70] sm:$0xff]  ;;  %v337_v39 = vld [vmem:[#allocation3 + $0x88] sm:$0xff]  ;;  %v339_v40 = vld [vmem:[#allocation3 + $0x98] sm:$0xff]  ;;  %p844_p12 = pnand %p843_p11, %p837_p8 }
  0x1d   :  { %v45_v41 = vld [vmem:[%s1133_s0 + $0x18] sm:$0xff]  ;;  %v727_v42 = vpack.c.bf16 %v334_v38, %v332_v37  ;;  %v729_v43 = vpack.c.bf16 %v339_v40, %v337_v39  ;;  %v336_v44 = vld [vmem:[#allocation3 + $0x80] sm:$0xff]  ;;  %v338_v45 = vld [vmem:[#allocation3 + $0x90] sm:$0xff] }
  0x1e   :  { %689 = vmatmul.mubr.msk.f32.vlgmr.msra.gmra.mrb[0].mxu0 %vm78_vm0, %v42_v13  ;;  %720 = vmatpush1.bf16.msra.mxu1 %v719_v28  ;;  %v341_v46 = vld [vmem:[#allocation3 + $0xa8] sm:$0xff]  ;;  %v343_v47 = vld [vmem:[#allocation3 + $0xb8] sm:$0xff]  ;;  %v46_v48 = vld [vmem:[%s1133_s0 + $0x20] sm:$0xff]  ;;  %v731_v49 = vpack.c.bf16 %v338_v45, %v336_v44 }
  0x1f   :  { %197 = vmatprep.mubr.f32.mxu0 %v865_v0  ;;  %722 = vmatprep.subr.bf16.mxu1 %v721_v29  ;;  %v733_v50 = vpack.c.bf16 %v343_v47, %v341_v46  ;;  %v340_v51 = vld [vmem:[#allocation3 + $0xa0] sm:$0xff]  ;;  %v342_v52 = vld [vmem:[#allocation3 + $0xb0] sm:$0xff]  ;;  %v345_v53 = vld [vmem:[#allocation3 + $0xc8] sm:$0xff] }
  0x20   :  { %v347_v54 = vld [vmem:[#allocation3 + $0xd8] sm:$0xff]  ;;  %v47_v55 = vld [vmem:[%s1133_s0 + $0x28] sm:$0xff]  ;;  %v735_v56 = vpack.c.bf16 %v342_v52, %v340_v51  ;;  %v344_v58 = vld [vmem:[#allocation3 + $0xc0] sm:$0xff] }
  0x21   :  { %v737_v57 = vpack.c.bf16 %v347_v54, %v345_v53  ;;  %v346_v59 = vld [vmem:[#allocation3 + $0xd0] sm:$0xff]  ;;  %v349_v60 = vld [vmem:[#allocation3 + $0xe8] sm:$0xff]  ;;  %v351_v61 = vld [vmem:[#allocation3 + $0xf8] sm:$0xff] }
  0x22   :  { %690 = vmatmul.mubr.msk.f32.gmra.mrb[2].mxu0 %vm78_vm0, %v43_v27  ;;  %724 = vmatpush1.bf16.msra.mxu1 %v723_v35  ;;  %v48_v62 = vld [vmem:[%s1133_s0 + $0x30] sm:$0xff]  ;;  %v739_v63 = vpack.c.bf16 %v346_v59, %v344_v58  ;;  %v741_v1 = vpack.c.bf16 %v351_v61, %v349_v60  ;;  %v348_v2 = vld [vmem:[#allocation3 + $0xe0] sm:$0xff]  ;;  %v353_v4 = vld [vmem:[#allocation3 + $0x108] sm:$0xff] }
  0x23   :  { %203 = vmatprep.mubr.f32.mxu0 %v865_v0  ;;  %726 = vmatprep.subr.bf16.mxu1 %v725_v36  ;;  %v350_v3 = vld [vmem:[#allocation3 + $0xf0] sm:$0xff]  ;;  %v355_v5 = vld [vmem:[#allocation3 + $0x118] sm:$0xff]  ;;  %v352_v9 = vld [vmem:[#allocation3 + $0x100] sm:$0xff] }
  0x24   :  { %v49_v6 = vld [vmem:[%s1133_s0 + $0x38] sm:$0xff]  ;;  %v743_v7 = vpack.c.bf16 %v350_v3, %v348_v2  ;;  %v745_v8 = vpack.c.bf16 %v355_v5, %v353_v4  ;;  %v354_v10 = vld [vmem:[#allocation3 + $0x110] sm:$0xff]  ;;  %v357_v11 = vld [vmem:[#allocation3 + $0x128] sm:$0xff] }
  0x25   :  { %v359_v12 = vld [vmem:[#allocation3 + $0x138] sm:$0xff]  ;;  %v50_v13 = vld [vmem:[%s1133_s0 + $0x40] sm:$0xff]  ;;  %v747_v14 = vpack.c.bf16 %v354_v10, %v352_v9  ;;  %v358_v17 = vld [vmem:[#allocation3 + $0x130] sm:$0xff] }
  0x26   :  { %691 = vmatmul.mubr.msk.f32.gmra.mrb[4].mxu0 %vm78_vm0, %v44_v34  ;;  %728 = vmatpush1.bf16.msra.mxu1 %v727_v42  ;;  %v749_v15 = vpack.c.bf16 %v359_v12, %v357_v11  ;;  %v356_v16 = vld [vmem:[#allocation3 + $0x120] sm:$0xff]  ;;  %v361_v18 = vld [vmem:[#allocation3 + $0x148] sm:$0xff]  ;;  %v363_v19 = vld [vmem:[#allocation3 + $0x158] sm:$0xff] }
  0x27   :  { %209 = vmatprep.mubr.f32.mxu0 %v865_v0  ;;  %730 = vmatprep.subr.bf16.mxu1 %v729_v43  ;;  %v51_v20 = vld [vmem:[%s1133_s0 + $0x48] sm:$0xff]  ;;  %v751_v21 = vpack.c.bf16 %v358_v17, %v356_v16  ;;  %v753_v22 = vpack.c.bf16 %v363_v19, %v361_v18  ;;  %v360_v23 = vld [vmem:[#allocation3 + $0x140] sm:$0xff]  ;;  %v362_v24 = vld [vmem:[#allocation3 + $0x150] sm:$0xff] }
  0x28   :  { %v365_v25 = vld [vmem:[#allocation3 + $0x168] sm:$0xff]  ;;  %v367_v26 = vld [vmem:[#allocation3 + $0x178] sm:$0xff]  ;;  %v52_v27 = vld [vmem:[%s1133_s0 + $0x50] sm:$0xff]  ;;  %v755_v28 = vpack.c.bf16 %v362_v24, %v360_v23 }
  0x29   :  { %v757_v29 = vpack.c.bf16 %v367_v26, %v365_v25  ;;  %v364_v30 = vld [vmem:[#allocation3 + $0x160] sm:$0xff]  ;;  %v366_v31 = vld [vmem:[#allocation3 + $0x170] sm:$0xff]  ;;  %v369_v32 = vld [vmem:[#allocation3 + $0x188] sm:$0xff] }
  0x2a   :  { %692 = vmatmul.mubr.msk.f32.gmra.mrb[6].mxu0 %vm78_vm0, %v45_v41  ;;  %732 = vmatpush1.bf16.msra.mxu1 %v731_v49  ;;  %v371_v33 = vld [vmem:[#allocation3 + $0x198] sm:$0xff]  ;;  %v759_v35 = vpack.c.bf16 %v366_v31, %v364_v30  ;;  %v368_v37 = vld [vmem:[#allocation3 + $0x180] sm:$0xff]  ;;  %v370_v38 = vld [vmem:[#allocation3 + $0x190] sm:$0xff] }
  0x2b   :  { %215 = vmatprep.mubr.f32.mxu0 %v865_v0  ;;  %734 = vmatprep.subr.bf16.mxu1 %v733_v50  ;;  %v53_v34 = vld [vmem:[%s1133_s0 + $0x58] sm:$0xff]  ;;  %v761_v36 = vpack.c.bf16 %v371_v33, %v369_v32  ;;  %v373_v39 = vld [vmem:[#allocation3 + $0x1a8] sm:$0xff]  ;;  %v54_v41 = vld [vmem:[%s1133_s0 + $0x60] sm:$0xff]  ;;  %v763_v42 = vpack.c.bf16 %v370_v38, %v368_v37 }
  0x2c   :  { %v375_v40 = vld [vmem:[#allocation3 + $0x1b8] sm:$0xff]  ;;  %v372_v44 = vld [vmem:[#allocation3 + $0x1a0] sm:$0xff]  ;;  %v374_v45 = vld [vmem:[#allocation3 + $0x1b0] sm:$0xff] }
  0x2d   :  { %v765_v43 = vpack.c.bf16 %v375_v40, %v373_v39  ;;  %v377_v46 = vld [vmem:[#allocation3 + $0x1c8] sm:$0xff]  ;;  %v379_v47 = vld [vmem:[#allocation3 + $0x1d8] sm:$0xff]  ;;  %v767_v49 = vpack.c.bf16 %v374_v45, %v372_v44  ;;  %v56_v51 = vld [vmem:[%s1133_s0 + $0x70] sm:$0xff] }
  0x2e   :  { %693 = vmatmul.mubr.msk.f32.gmra.mrb[8].mxu0 %vm78_vm0, %v46_v48  ;;  %736 = vmatpush1.bf16.msra.mxu1 %v735_v56  ;;  %v55_v48 = vld [vmem:[%s1133_s0 + $0x68] sm:$0xff]  ;;  %v769_v50 = vpack.c.bf16 %v379_v47, %v377_v46  ;;  %v57_v52 = vld [vmem:[%s1133_s0 + $0x78] sm:$0xff]  ;;  %v376_v53 = vld [vmem:[#allocation3 + $0x1c0] sm:$0xff] }
  0x2f   :  { %221 = vmatprep.mubr.f32.mxu0 %v865_v0  ;;  %738 = vmatprep.subr.bf16.mxu1 %v737_v57  ;;  %v378_v54 = vld [vmem:[#allocation3 + $0x1d0] sm:$0xff]  ;;  %v381_v56 = vld [vmem:[#allocation3 + $0x1e8] sm:$0xff]  ;;  %v383_v57 = vld [vmem:[#allocation3 + $0x1f8] sm:$0xff] }
  0x30   :  { %v773_v58 = vpack.c.bf16 %v383_v57, %v381_v56  ;;  %v380_v59 = vld [vmem:[#allocation3 + $0x1e0] sm:$0xff]  ;;  %v382_v60 = vld [vmem:[#allocation3 + $0x1f0] sm:$0xff] }
  0x31   :  { %v775_v61 = vpack.c.bf16 %v382_v60, %v380_v59 }
  0x32   :  { %694 = vmatmul.mubr.msk.f32.gmra.mrb[10].mxu0 %vm78_vm0, %v47_v55  ;;  %740 = vmatpush1.bf16.msra.mxu1 %v739_v63  ;;  %v771_v55 = vpack.c.bf16 %v378_v54, %v376_v53 }
  0x33   :  { %227 = vmatprep.mubr.f32.mxu0 %v865_v0  ;;  %742 = vmatprep.subr.bf16.mxu1 %v741_v1  ;;  %v66_v1 = vld [vmem:[%s1135_s2] sm:$0x3] }
  0x36   :  { %695 = vmatmul.mubr.msk.f32.gmra.mrb[12].mxu0 %vm78_vm0, %v48_v62  ;;  %744 = vmatpush1.bf16.msra.mxu1 %v743_v7  ;;  %v68_v62 = vlaneseq }
  0x37   :  { %233 = vmatprep.mubr.f32.mxu0 %v865_v0  ;;  %746 = vmatprep.subr.bf16.mxu1 %v745_v8 }
  0x3a   :  { %696 = vmatmul.mubr.msk.f32.gmra.mrb[14].mxu0 %vm78_vm0, %v49_v6  ;;  %748 = vmatpush1.bf16.msra.mxu1 %v747_v14 }
  0x3b   :  { %239 = vmatprep.mubr.f32.mxu0 %v865_v0  ;;  %750 = vmatprep.subr.bf16.mxu1 %v749_v15 }
  0x3e   :  { %697 = vmatmul.mubr.msk.f32.gmra.mrb[16].mxu0 %vm78_vm0, %v50_v13  ;;  %752 = vmatpush1.bf16.msra.mxu1 %v751_v21 }
  0x3f   :  { %245 = vmatprep.mubr.f32.mxu0 %v865_v0  ;;  %754 = vmatprep.subr.bf16.mxu1 %v753_v22 }
  0x42   :  { %698 = vmatmul.mubr.msk.f32.gmra.mrb[18].mxu0 %vm78_vm0, %v51_v20  ;;  %756 = vmatpush1.bf16.msra.mxu1 %v755_v28 }
  0x43   :  { %251 = vmatprep.mubr.f32.mxu0 %v865_v0  ;;  %758 = vmatprep.subr.bf16.mxu1 %v757_v29 }
  0x46   :  { %699 = vmatmul.mubr.msk.f32.gmra.mrb[20].mxu0 %vm78_vm0, %v52_v27  ;;  %760 = vmatpush1.bf16.msra.mxu1 %v759_v35 }
  0x47   :  { %257 = vmatprep.mubr.f32.mxu0 %v865_v0  ;;  %762 = vmatprep.subr.bf16.mxu1 %v761_v36 }
  0x4a   :  { %700 = vmatmul.mubr.msk.f32.gmra.mrb[22].mxu0 %vm78_vm0, %v53_v34  ;;  %764 = vmatpush1.bf16.msra.mxu1 %v763_v42 }
  0x4b   :  { %263 = vmatprep.mubr.f32.mxu0 %v865_v0  ;;  %766 = vmatprep.subr.bf16.mxu1 %v765_v43 }
  0x4e   :  { %701 = vmatmul.mubr.msk.f32.gmra.mrb[24].mxu0 %vm78_vm0, %v54_v41  ;;  %768 = vmatpush1.bf16.msra.mxu1 %v767_v49 }
  0x4f   :  { %269 = vmatprep.mubr.f32.mxu0 %v865_v0  ;;  %770 = vmatprep.subr.bf16.mxu1 %v769_v50 }
  0x52   :  { %702 = vmatmul.mubr.msk.f32.gmra.mrb[26].mxu0 %vm78_vm0, %v55_v48  ;;  %772 = vmatpush1.bf16.msra.mxu1 %v771_v55 }
  0x53   :  { %275 = vmatprep.mubr.f32.mxu0 %v865_v0  ;;  %774 = vmatprep.subr.bf16.mxu1 %v773_v58 }
  0x56   :  { %703 = vmatmul.mubr.msk.f32.gmra.mrb[28].mxu0 %vm78_vm0, %v56_v51  ;;  %776 = vmatpush1.bf16.msra.mxu1 %v775_v61 }
  0x57   :  { %281 = vmatprep.mubr.f32.mxu0 %v865_v0  ;;  %v69_v0 = vshrl.u32 %v68_v62, 7 }
  0x59   :  { %v1023_v63 = vsub.s32 0, %v69_v0  ;;  %v1028_v2 = vsub.s32 1, %v69_v0 }
  0x5a   :  { %704 = vmatmul.mubr.msk.f32.gmra.mrb[30].mxu0 %vm78_vm0, %v57_v52 }
  0x5b   :  { %v1031_v3 = vrot.slane %v66_v1, %v1023_v63  ;;  %v1034_v4 = vrot.slane %v66_v1, %v1028_v2 }
  0xf1   :  { %v193_v5 = vpop.f32.mrb[0].mxu0 }
  0xf2   :  { %v194_v6 = vadd.f32 %v193_v5, %v1031_v3  ;;  %v195_v7 = vpop.f32.mrb[1].mxu0 }
  0xf3   :  { %v196_v8 = vadd.f32 %v195_v7, %v1034_v4 }
  0xf4   :  { %v288_v11 = vmax.f32 %v194_v6, 0.0 }
  0xf5   :  { %v199_v9 = vpop.f32.mrb[2].mxu0  ;;  %v289_v10 = vmax.f32 %v196_v8, 0.0 }
  0xf6   :  { %v200_v12 = vadd.f32 %v199_v9, %v1031_v3  ;;  %v201_v13 = vpop.f32.mrb[3].mxu0 }
  0xf7   :  { %v202_v14 = vadd.f32 %v201_v13, %v1034_v4  ;;  %460 = vmatprep.mubr.f32.mxu1 %v289_v10 }
  0xf8   :  { %461 = vmatmul.mubr.f32.vlgmr.msra.gmra.mrb[0].mxu1 %v288_v11  ;;  %v290_v17 = vmax.f32 %v200_v12, 0.0 }
  0xf9   :  { %v291_v15 = vmax.f32 %v202_v14, 0.0  ;;  %v205_v16 = vpop.f32.mrb[4].mxu0 }
  0xfa   :  { %v206_v18 = vadd.f32 %v205_v16, %v1031_v3  ;;  %v207_v19 = vpop.f32.mrb[5].mxu0 }
  0xfb   :  { %v208_v20 = vadd.f32 %v207_v19, %v1034_v4  ;;  %466 = vmatprep.mubr.f32.mxu1 %v291_v15 }
  0xfc   :  { %467 = vmatmul.mubr.f32.gmra.mrb[2].mxu1 %v290_v17  ;;  %v292_v23 = vmax.f32 %v206_v18, 0.0 }
  0xfd   :  { %v293_v21 = vmax.f32 %v208_v20, 0.0  ;;  %v211_v22 = vpop.f32.mrb[6].mxu0 }
  0xfe   :  { %v212_v24 = vadd.f32 %v211_v22, %v1031_v3  ;;  %v213_v25 = vpop.f32.mrb[7].mxu0 }
  0xff   :  { %v214_v26 = vadd.f32 %v213_v25, %v1034_v4  ;;  %472 = vmatprep.mubr.f32.mxu1 %v293_v21 }
 0x100   :  { %473 = vmatmul.mubr.f32.gmra.mrb[4].mxu1 %v292_v23  ;;  %v294_v29 = vmax.f32 %v212_v24, 0.0 }
 0x101   :  { %v295_v27 = vmax.f32 %v214_v26, 0.0  ;;  %v217_v28 = vpop.f32.mrb[8].mxu0 }
 0x102   :  { %v218_v30 = vadd.f32 %v217_v28, %v1031_v3  ;;  %v219_v31 = vpop.f32.mrb[9].mxu0 }
 0x103   :  { %v220_v32 = vadd.f32 %v219_v31, %v1034_v4  ;;  %478 = vmatprep.mubr.f32.mxu1 %v295_v27 }
 0x104   :  { %479 = vmatmul.mubr.f32.gmra.mrb[6].mxu1 %v294_v29  ;;  %v296_v35 = vmax.f32 %v218_v30, 0.0 }
 0x105   :  { %v297_v33 = vmax.f32 %v220_v32, 0.0  ;;  %v223_v34 = vpop.f32.mrb[10].mxu0 }
 0x106   :  { %v224_v36 = vadd.f32 %v223_v34, %v1031_v3  ;;  %v225_v37 = vpop.f32.mrb[11].mxu0 }
 0x107   :  { %v226_v38 = vadd.f32 %v225_v37, %v1034_v4  ;;  %484 = vmatprep.mubr.f32.mxu1 %v297_v33 }
 0x108   :  { %485 = vmatmul.mubr.f32.gmra.mrb[8].mxu1 %v296_v35  ;;  %v298_v41 = vmax.f32 %v224_v36, 0.0 }
 0x109   :  { %v299_v39 = vmax.f32 %v226_v38, 0.0  ;;  %v229_v40 = vpop.f32.mrb[12].mxu0 }
 0x10a   :  { %v230_v42 = vadd.f32 %v229_v40, %v1031_v3  ;;  %v231_v43 = vpop.f32.mrb[13].mxu0 }
 0x10b   :  { %v232_v44 = vadd.f32 %v231_v43, %v1034_v4  ;;  %490 = vmatprep.mubr.f32.mxu1 %v299_v39 }
 0x10c   :  { %491 = vmatmul.mubr.f32.gmra.mrb[10].mxu1 %v298_v41  ;;  %v300_v47 = vmax.f32 %v230_v42, 0.0  ;;  %v1071_v41 = vld [vmem:[%s1138_s5] sm:$0x3] }
 0x10d   :  { %v301_v45 = vmax.f32 %v232_v44, 0.0  ;;  %v235_v46 = vpop.f32.mrb[14].mxu0  ;;  %v600_v42 = vrot.slane %v1071_v41, %v1028_v2 }
 0x10e   :  { %v236_v48 = vadd.f32 %v235_v46, %v1031_v3  ;;  %v237_v49 = vpop.f32.mrb[15].mxu0 }
 0x10f   :  { %v238_v50 = vadd.f32 %v237_v49, %v1034_v4  ;;  %496 = vmatprep.mubr.f32.mxu1 %v301_v45  ;;  %667 = vmatprep.mubr.f32.mxu0 %v600_v42 }
 0x110   :  { %497 = vmatmul.mubr.f32.gmra.mrb[12].mxu1 %v300_v47  ;;  %v302_v53 = vmax.f32 %v236_v48, 0.0 }
 0x111   :  { %v303_v51 = vmax.f32 %v238_v50, 0.0  ;;  %v241_v52 = vpop.f32.mrb[16].mxu0 }
 0x112   :  { %v242_v54 = vadd.f32 %v241_v52, %v1031_v3  ;;  %v243_v55 = vpop.f32.mrb[17].mxu0 }
 0x113   :  { %v244_v56 = vadd.f32 %v243_v55, %v1034_v4  ;;  %502 = vmatprep.mubr.f32.mxu1 %v303_v51 }
 0x114   :  { %503 = vmatmul.mubr.f32.gmra.mrb[14].mxu1 %v302_v53  ;;  %v304_v59 = vmax.f32 %v242_v54, 0.0 }
 0x115   :  { %v305_v57 = vmax.f32 %v244_v56, 0.0  ;;  %v247_v58 = vpop.f32.mrb[18].mxu0 }
 0x116   :  { %v248_v60 = vadd.f32 %v247_v58, %v1031_v3  ;;  %v249_v61 = vpop.f32.mrb[19].mxu0 }
 0x117   :  { %v250_v62 = vadd.f32 %v249_v61, %v1034_v4  ;;  %508 = vmatprep.mubr.f32.mxu1 %v305_v57 }
 0x118   :  { %509 = vmatmul.mubr.f32.gmra.mrb[16].mxu1 %v304_v59  ;;  %v306_v5 = vmax.f32 %v248_v60, 0.0 }
 0x119   :  { %v307_v0 = vmax.f32 %v250_v62, 0.0  ;;  %v253_v1 = vpop.f32.mrb[20].mxu0 }
 0x11a   :  { %v254_v6 = vadd.f32 %v253_v1, %v1031_v3  ;;  %v255_v7 = vpop.f32.mrb[21].mxu0 }
 0x11b   :  { %v256_v8 = vadd.f32 %v255_v7, %v1034_v4  ;;  %514 = vmatprep.mubr.f32.mxu1 %v307_v0 }
 0x11c   :  { %515 = vmatmul.mubr.f32.gmra.mrb[18].mxu1 %v306_v5  ;;  %v308_v11 = vmax.f32 %v254_v6, 0.0 }
 0x11d   :  { %v309_v9 = vmax.f32 %v256_v8, 0.0  ;;  %v259_v10 = vpop.f32.mrb[22].mxu0 }
 0x11e   :  { %v260_v12 = vadd.f32 %v259_v10, %v1031_v3  ;;  %v261_v13 = vpop.f32.mrb[23].mxu0 }
 0x11f   :  { %v262_v14 = vadd.f32 %v261_v13, %v1034_v4  ;;  %520 = vmatprep.mubr.f32.mxu1 %v309_v9 }
 0x120   :  { %521 = vmatmul.mubr.f32.gmra.mrb[20].mxu1 %v308_v11  ;;  %v310_v17 = vmax.f32 %v260_v12, 0.0 }
 0x121   :  { %v311_v15 = vmax.f32 %v262_v14, 0.0  ;;  %v265_v16 = vpop.f32.mrb[24].mxu0 }
 0x122   :  { %v266_v18 = vadd.f32 %v265_v16, %v1031_v3  ;;  %v267_v19 = vpop.f32.mrb[25].mxu0 }
 0x123   :  { %v268_v20 = vadd.f32 %v267_v19, %v1034_v4  ;;  %526 = vmatprep.mubr.f32.mxu1 %v311_v15 }
 0x124   :  { %527 = vmatmul.mubr.f32.gmra.mrb[22].mxu1 %v310_v17  ;;  %v312_v23 = vmax.f32 %v266_v18, 0.0 }
 0x125   :  { %v313_v21 = vmax.f32 %v268_v20, 0.0  ;;  %v271_v22 = vpop.f32.mrb[26].mxu0 }
 0x126   :  { %v272_v24 = vadd.f32 %v271_v22, %v1031_v3  ;;  %v273_v25 = vpop.f32.mrb[27].mxu0 }
 0x127   :  { %v274_v26 = vadd.f32 %v273_v25, %v1034_v4  ;;  %532 = vmatprep.mubr.f32.mxu1 %v313_v21 }
 0x128   :  { %533 = vmatmul.mubr.f32.gmra.mrb[24].mxu1 %v312_v23  ;;  %v314_v29 = vmax.f32 %v272_v24, 0.0 }
 0x129   :  { %v315_v27 = vmax.f32 %v274_v26, 0.0  ;;  %v277_v28 = vpop.f32.mrb[28].mxu0 }
 0x12a   :  { %v278_v30 = vadd.f32 %v277_v28, %v1031_v3  ;;  %v279_v31 = vpop.f32.mrb[29].mxu0 }
 0x12b   :  { %v280_v32 = vadd.f32 %v279_v31, %v1034_v4  ;;  %538 = vmatprep.mubr.f32.mxu1 %v315_v27 }
 0x12c   :  { %539 = vmatmul.mubr.f32.gmra.mrb[26].mxu1 %v314_v29  ;;  %v316_v35 = vmax.f32 %v278_v30, 0.0 }
 0x12d   :  { %v317_v33 = vmax.f32 %v280_v32, 0.0  ;;  %v283_v34 = vpop.f32.mrb[30].mxu0 }
 0x12e   :  { %v284_v36 = vadd.f32 %v283_v34, %v1031_v3  ;;  %v285_v37 = vpop.f32.mrb[31].mxu0  ;;  %v384_v3 = vld [vmem:[%s1137_s4] sm:$0x3] }
 0x12f   :  { %v286_v38 = vadd.f32 %v285_v37, %v1034_v4  ;;  %544 = vmatprep.mubr.f32.mxu1 %v317_v33  ;;  %v1079_v4 = vrot.slane %v384_v3, %v1023_v63  ;;  %v1082_v44 = vrot.slane %v384_v3, %v1028_v2 }
 0x130   :  { %545 = vmatmul.mubr.f32.gmra.mrb[28].mxu1 %v316_v35  ;;  %v318_v40 = vmax.f32 %v284_v36, 0.0 }
 0x131   :  { %v319_v39 = vmax.f32 %v286_v38, 0.0 }
 0x133   :  { %550 = vmatprep.mubr.f32.mxu1 %v319_v39 }
 0x134   :  { %551 = vmatmul.mubr.f32.gmra.mrb[30].mxu1 %v318_v40 }
 0x1cb   :  { %v462_v43 = vpop.f32.mrb[0].mxu1 }
 0x1cc   :  { %v464_v45 = vpop.f32.mrb[1].mxu1  ;;  %v463_v46 = vadd.f32 %v462_v43, %v1079_v4 }
 0x1cd   :  { %v465_v47 = vadd.f32 %v464_v45, %v1082_v44 }
 0x1ce   :  { %v557_v52 = vmax.f32 %v463_v46, 0.0 }
 0x1cf   :  { %v468_v48 = vpop.f32.mrb[2].mxu1  ;;  %v558_v54 = vmax.f32 %v465_v47, 0.0 }
 0x1d0   :  { %v469_v49 = vadd.f32 %v468_v48, %v1079_v4  ;;  %v470_v50 = vpop.f32.mrb[3].mxu1 }
 0x1d1   :  { %v471_v51 = vadd.f32 %v470_v50, %v1082_v44 }
 0x1d2   :  { %v559_v53 = vmax.f32 %v469_v49, 0.0 }
 0x1d3   :  { %v560_v55 = vmax.f32 %v471_v51, 0.0  ;;  %v474_v56 = vpop.f32.mrb[4].mxu1 }
 0x1d4   :  { %v779_v57 = vpack.c.bf16 %v559_v53, %v557_v52  ;;  %v476_v58 = vpop.f32.mrb[5].mxu1  ;;  %v475_v59 = vadd.f32 %v474_v56, %v1079_v4 }
 0x1d5   :  { %v777_v2 = vpack.c.bf16 %v560_v55, %v558_v54  ;;  %v477_v60 = vadd.f32 %v476_v58, %v1082_v44 }
 0x1d6   :  { %v561_v5 = vmax.f32 %v475_v59, 0.0 }
 0x1d7   :  { %v480_v61 = vpop.f32.mrb[6].mxu1  ;;  %778 = vmatprep.subr.bf16.mxu0 %v777_v2  ;;  %v562_v7 = vmax.f32 %v477_v60, 0.0 }
 0x1d8   :  { %v481_v62 = vadd.f32 %v480_v61, %v1079_v4  ;;  %v482_v0 = vpop.f32.mrb[7].mxu1  ;;  %780 = vmatpush1.bf16.xpose.msra.mxu0 %v779_v57 }
 0x1d9   :  { %v483_v1 = vadd.f32 %v482_v0, %v1082_v44 }
 0x1da   :  { %v563_v6 = vmax.f32 %v481_v62, 0.0 }
 0x1db   :  { %v564_v8 = vmax.f32 %v483_v1, 0.0  ;;  %v486_v9 = vpop.f32.mrb[8].mxu1 }
 0x1dc   :  { %v783_v10 = vpack.c.bf16 %v563_v6, %v561_v5  ;;  %v488_v11 = vpop.f32.mrb[9].mxu1  ;;  %v487_v13 = vadd.f32 %v486_v9, %v1079_v4 }
 0x1dd   :  { %v781_v12 = vpack.c.bf16 %v564_v8, %v562_v7  ;;  %v489_v14 = vadd.f32 %v488_v11, %v1082_v44 }
 0x1de   :  { %v565_v19 = vmax.f32 %v487_v13, 0.0 }
 0x1df   :  { %v492_v15 = vpop.f32.mrb[10].mxu1  ;;  %782 = vmatprep.subr.bf16.mxu0 %v781_v12  ;;  %v566_v21 = vmax.f32 %v489_v14, 0.0 }
 0x1e0   :  { %v493_v16 = vadd.f32 %v492_v15, %v1079_v4  ;;  %v494_v17 = vpop.f32.mrb[11].mxu1  ;;  %784 = vmatpush1.bf16.xpose.msra.mxu0 %v783_v10 }
 0x1e1   :  { %v495_v18 = vadd.f32 %v494_v17, %v1082_v44 }
 0x1e2   :  { %v567_v20 = vmax.f32 %v493_v16, 0.0 }
 0x1e3   :  { %v568_v22 = vmax.f32 %v495_v18, 0.0  ;;  %v498_v23 = vpop.f32.mrb[12].mxu1 }
 0x1e4   :  { %v787_v24 = vpack.c.bf16 %v567_v20, %v565_v19  ;;  %v500_v25 = vpop.f32.mrb[13].mxu1  ;;  %v499_v27 = vadd.f32 %v498_v23, %v1079_v4 }
 0x1e5   :  { %v785_v26 = vpack.c.bf16 %v568_v22, %v566_v21  ;;  %v501_v28 = vadd.f32 %v500_v25, %v1082_v44 }
 0x1e6   :  { %v569_v33 = vmax.f32 %v499_v27, 0.0 }
 0x1e7   :  { %v504_v29 = vpop.f32.mrb[14].mxu1  ;;  %786 = vmatprep.subr.bf16.mxu0 %v785_v26  ;;  %v570_v35 = vmax.f32 %v501_v28, 0.0 }
 0x1e8   :  { %v505_v30 = vadd.f32 %v504_v29, %v1079_v4  ;;  %v506_v31 = vpop.f32.mrb[15].mxu1  ;;  %788 = vmatpush1.bf16.xpose.msra.mxu0 %v787_v24 }
 0x1e9   :  { %v507_v32 = vadd.f32 %v506_v31, %v1082_v44 }
 0x1ea   :  { %v571_v34 = vmax.f32 %v505_v30, 0.0 }
 0x1eb   :  { %v572_v36 = vmax.f32 %v507_v32, 0.0  ;;  %v510_v37 = vpop.f32.mrb[16].mxu1 }
 0x1ec   :  { %v791_v38 = vpack.c.bf16 %v571_v34, %v569_v33  ;;  %v512_v39 = vpop.f32.mrb[17].mxu1  ;;  %v511_v42 = vadd.f32 %v510_v37, %v1079_v4 }
 0x1ed   :  { %v789_v40 = vpack.c.bf16 %v572_v36, %v570_v35  ;;  %v513_v3 = vadd.f32 %v512_v39, %v1082_v44  ;;  %v596_v35 = vrot.slane %v1071_v41, %v1023_v63 }
 0x1ee   :  { %v573_v48 = vmax.f32 %v511_v42, 0.0 }
 0x1ef   :  { %v516_v43 = vpop.f32.mrb[18].mxu1  ;;  %790 = vmatprep.subr.bf16.mxu0 %v789_v40  ;;  %v574_v50 = vmax.f32 %v513_v3, 0.0 }
 0x1f0   :  { %v517_v45 = vadd.f32 %v516_v43, %v1079_v4  ;;  %v518_v46 = vpop.f32.mrb[19].mxu1  ;;  %792 = vmatpush1.bf16.xpose.msra.mxu0 %v791_v38 }
 0x1f1   :  { %v519_v47 = vadd.f32 %v518_v46, %v1082_v44 }
 0x1f2   :  { %v575_v49 = vmax.f32 %v517_v45, 0.0 }
 0x1f3   :  { %v576_v51 = vmax.f32 %v519_v47, 0.0  ;;  %v522_v52 = vpop.f32.mrb[20].mxu1 }
 0x1f4   :  { %v795_v53 = vpack.c.bf16 %v575_v49, %v573_v48  ;;  %v524_v54 = vpop.f32.mrb[21].mxu1  ;;  %v523_v56 = vadd.f32 %v522_v52, %v1079_v4 }
 0x1f5   :  { %v793_v55 = vpack.c.bf16 %v576_v51, %v574_v50  ;;  %v525_v57 = vadd.f32 %v524_v54, %v1082_v44 }
 0x1f6   :  { %v577_v61 = vmax.f32 %v523_v56, 0.0 }
 0x1f7   :  { %v528_v58 = vpop.f32.mrb[22].mxu1  ;;  %794 = vmatprep.subr.bf16.mxu0 %v793_v55  ;;  %v578_v0 = vmax.f32 %v525_v57, 0.0 }
 0x1f8   :  { %v529_v2 = vadd.f32 %v528_v58, %v1079_v4  ;;  %v530_v59 = vpop.f32.mrb[23].mxu1  ;;  %796 = vmatpush1.bf16.xpose.msra.mxu0 %v795_v53 }
 0x1f9   :  { %v531_v60 = vadd.f32 %v530_v59, %v1082_v44 }
 0x1fa   :  { %v579_v62 = vmax.f32 %v529_v2, 0.0 }
 0x1fb   :  { %v580_v1 = vmax.f32 %v531_v60, 0.0  ;;  %v534_v5 = vpop.f32.mrb[24].mxu1 }
 0x1fc   :  { %v799_v6 = vpack.c.bf16 %v579_v62, %v577_v61  ;;  %v536_v7 = vpop.f32.mrb[25].mxu1  ;;  %v535_v9 = vadd.f32 %v534_v5, %v1079_v4 }
 0x1fd   :  { %v797_v8 = vpack.c.bf16 %v580_v1, %v578_v0  ;;  %v537_v10 = vadd.f32 %v536_v7, %v1082_v44 }
 0x1fe   :  { %v581_v15 = vmax.f32 %v535_v9, 0.0 }
 0x1ff   :  { %v540_v11 = vpop.f32.mrb[26].mxu1  ;;  %798 = vmatprep.subr.bf16.mxu0 %v797_v8  ;;  %v582_v17 = vmax.f32 %v537_v10, 0.0 }
 0x200   :  { %v541_v12 = vadd.f32 %v540_v11, %v1079_v4  ;;  %v542_v13 = vpop.f32.mrb[27].mxu1  ;;  %800 = vmatpush1.bf16.xpose.msra.mxu0 %v799_v6 }
 0x201   :  { %v543_v14 = vadd.f32 %v542_v13, %v1082_v44 }
 0x202   :  { %v583_v16 = vmax.f32 %v541_v12, 0.0 }
 0x203   :  { %v584_v18 = vmax.f32 %v543_v14, 0.0  ;;  %v546_v19 = vpop.f32.mrb[28].mxu1 }
 0x204   :  { %v803_v20 = vpack.c.bf16 %v583_v16, %v581_v15  ;;  %v548_v21 = vpop.f32.mrb[29].mxu1  ;;  %v547_v23 = vadd.f32 %v546_v19, %v1079_v4 }
 0x205   :  { %v801_v22 = vpack.c.bf16 %v584_v18, %v582_v17  ;;  %v549_v24 = vadd.f32 %v548_v21, %v1082_v44 }
 0x206   :  { %v585_v29 = vmax.f32 %v547_v23, 0.0 }
 0x207   :  { %v552_v25 = vpop.f32.mrb[30].mxu1  ;;  %802 = vmatprep.subr.bf16.mxu0 %v801_v22  ;;  %v586_v31 = vmax.f32 %v549_v24, 0.0 }
 0x208   :  { %v553_v26 = vadd.f32 %v552_v25, %v1079_v4  ;;  %v554_v27 = vpop.f32.mrb[31].mxu1  ;;  %804 = vmatpush1.bf16.xpose.msra.mxu0 %v803_v20  ;;  %v591_v4 = vstv %s1139_s6 }
 0x209   :  { %v555_v28 = vadd.f32 %v554_v27, %v1082_v44 }
 0x20a   :  { %v587_v30 = vmax.f32 %v553_v26, 0.0 }
 0x20b   :  { %v588_v32 = vmax.f32 %v555_v28, 0.0 }
 0x20c   :  { %v807_v33 = vpack.c.bf16 %v587_v30, %v585_v29 }
 0x20d   :  { %v805_v34 = vpack.c.bf16 %v588_v32, %v586_v31 }
 0x20f   :  { %806 = vmatprep.subr.bf16.mxu0 %v805_v34 }
 0x210   :  { %808 = vmatpush1.bf16.xpose.msra.mxu0 %v807_v33 }
 0x217   :  { %668 = vmatmul.mubr.f32.vlgmr.msra.gmra.mrb[32].mxu0 %v596_v35 }
 0x2ea   :  { %v669_v36 = vpop.f32.mrb[32].mxu0 }
 0x2eb   :  { %v670_v44 = vadd.f32 %v669_v36, %v591_v4  ;;  %v671_v37 = vpop.f32.mrb[33].mxu0 }
 0x2ed   :  { %673 = vst [vmem:[#allocation6] sm:$0x1] %v670_v44 }
 0x2ee   :  { %847 = shalt.err (!%p844_p12)
}
 0x2ef   :  { %s848_s22 = scalar_lea.hbm %s1140_s7, 16 }
 0x2f0   :  { %p849_p13 = scmp.ne.s32.totalorder %s1140_s7, %s848_s22  ;;  %p852_p0 = scmp.lt.u32.totalorder %s848_s22, %s1140_s7 }
 0x2f2   :  { %p854_p1 = pnand %p852_p0, %p849_p13 }
 0x2f4   :  { %857 = shalt.err (!%p854_p1)
}
 0x2f5   :  { %683 = dma.vmem_to_hbm [thread:$0]  %s681_s18, 16, %s1140_s7, [#allocation5]  }
 0x2f6   :  { %860 = dma.done.wait [#allocation5], 16  }
 0x2f7   :  { %861 = vsyncadd [#allocation5], 4294967280 }
 0x2f8   :  { %687 = vsyncpa [#allocation4], 1 }
 0x2f9   :  { %688 = vsyncpa [#allocation5], 1 }

</bundles_post_ra>
